<compile_context>
chip_gen: v5e
topology: v5e:2x2
jax: 0.10.0
libtpu: 0.0.40
codegen_flags: <defaults>
</compile_context>

<pallas_src>
import functools
import math

import jax
import jax.numpy as jnp
from jax.experimental import pallas as pl
from jax.experimental.pallas import tpu as pltpu


def _ln_kernel_unpacked(x_ref, gamma_ref, beta_ref, o_ref, *, feat, eps):
    """One feature vector per row (lane dim == feat). One-pass moments."""
    x = x_ref[...].astype(jnp.float32)            # (R, feat)
    gamma = gamma_ref[...].astype(jnp.float32)    # (1, feat)
    beta = beta_ref[...].astype(jnp.float32)      # (1, feat)

    s = jnp.sum(x, axis=-1, keepdims=True)        # (R, 1)
    sq = jnp.sum(x * x, axis=-1, keepdims=True)   # (R, 1)
    mean = s * (1.0 / feat)
    # torch.std default = unbiased (ddof=1); one-pass form, clamp tiny
    # negative values from cancellation so sqrt never produces NaN.
    var = jnp.maximum((sq - s * mean) * (1.0 / (feat - 1)), 0.0)
    denom = jnp.sqrt(var) + eps                   # eps added to std (module semantics)
    inv = pl.reciprocal(denom, approx=True)       # EUP slot
    inv = inv * (2.0 - denom * inv)               # one Newton step: ~f32 accuracy
    o_ref[...] = ((x - mean) * inv * gamma + beta).astype(o_ref.dtype)


def _ln_kernel_packed(x_ref, gamma_ref, beta_ref, mask_ref, o_ref, *, feat, eps):
    """g = W // feat feature vectors per packed row (W = 128, lane-dense).

    Per-segment statistics via MXU matmuls against a block-diagonal 0/1
    matrix: the results come back already broadcast across each segment, so
    there is no lane slicing, no masked XLU reduce and no concat.
    """
    x = x_ref[...].astype(jnp.float32)            # (R, W)
    gamma = gamma_ref[...].astype(jnp.float32)    # (1, W)  gamma tiled g times
    beta = beta_ref[...].astype(jnp.float32)      # (1, W)
    m = mask_ref[...]                             # (W, W) f32 block-diag of ones

    sums = jnp.dot(x, m, preferred_element_type=jnp.float32)       # (R, W)
    sq = jnp.dot(x * x, m, preferred_element_type=jnp.float32)     # (R, W)
    mean = sums * (1.0 / feat)
    var = jnp.maximum((sq - sums * mean) * (1.0 / (feat - 1)), 0.0)
    denom = jnp.sqrt(var) + eps
    inv = pl.reciprocal(denom, approx=True)
    inv = inv * (2.0 - denom * inv)
    o_ref[...] = ((x - mean) * inv * gamma + beta).astype(o_ref.dtype)


def layer_norm(x, a_2, b_2, *, eps=1e-6,
               vmem_workset_budget=20 * 1024 * 1024,
               desired_steps=4):
    """x: (..., F); a_2, b_2: (F,). Normalizes along the last axis."""
    orig_shape = x.shape
    feat = int(orig_shape[-1])
    if feat < 2:
        raise ValueError("unbiased std needs at least 2 features")
    rows = math.prod(orig_shape[:-1]) if len(orig_shape) > 1 else 1
    dtype = x.dtype
    isz = jnp.dtype(dtype).itemsize

    # --- lane-dense packing (free row-major fold, never a pad/copy) ---------
    # Fold g feature vectors per packed row so loads/stores are full unmasked
    # 128-lane vectors.  Only when rows % g == 0 (no padding needed) and the
    # packed width stays 128 so the (W, W) block-diagonal MXU reduction is
    # cheap even for f32 inputs.
    # TODO(synk): extend packing to W = lcm(F, 128) (e.g. F=96 -> W=384) once
    # the f32 MXU cost of the wider reduction is verified to stay under HBM time.
    g = 1
    if feat < 128 and 128 % feat == 0 and rows % (128 // feat) == 0:
        g = 128 // feat
    w = g * feat
    packed_rows = rows // g

    # sublane packing: 8 rows f32 / 16 rows bf16 / 32 rows int8-fp8
    sub = max(8, 32 // isz)

    # --- tile sizing: budget against the f32 working set --------------------
    # Per packed row in VMEM: double-buffered input + double-buffered output
    # (native dtype) plus ~3 live (R, W) f32 temporaries inside the kernel.
    bytes_per_row = w * (2 * isz + 2 * isz + 12)
    budget_rows = max(sub, (vmem_workset_budget // bytes_per_row) // sub * sub)

    # Keep enough grid steps for DMA/compute overlap (and >= 2 per TC when the
    # "parallel" axis is sharded across v7x's two TensorCores), but never
    # shrink a step below ~1 MiB per input buffer (per-step overhead regime).
    row_io_bytes = w * isz
    min_floor_rows = max(sub, ((1 << 20) // row_io_bytes) // sub * sub)
    step_rows = -(-packed_rows // desired_steps)
    step_rows = -(-step_rows // sub) * sub
    rows_per_tile = min(budget_rows, max(min_floor_rows, step_rows))
    if rows_per_tile >= packed_rows:
        # Single block covering the whole (small) array: block dim == full
        # array dim is always a legal TPU block shape.
        rows_per_tile = packed_rows

    grid_rows = -(-packed_rows // rows_per_tile)

    # No wrapper-side padding: if the last block is partial, Pallas masks the
    # out-of-range rows on writeback (garbage rows never reach HBM).
    xp = x.reshape(packed_rows, w)                      # free row-major fold
    gamma = jnp.tile(a_2.reshape(1, feat), (1, g))      # (1, W)
    beta = jnp.tile(b_2.reshape(1, feat), (1, g))       # (1, W)

    common_specs = [
        pl.BlockSpec((rows_per_tile, w), lambda i: (i, 0)),   # x
        pl.BlockSpec((1, w), lambda i: (0, 0)),               # gamma (loaded once)
        pl.BlockSpec((1, w), lambda i: (0, 0)),               # beta  (loaded once)
    ]
    if g > 1:
        seg = jnp.arange(w, dtype=jnp.int32) // feat
        blockdiag = (seg[:, None] == seg[None, :]).astype(jnp.float32)  # (W, W)
        kernel = functools.partial(_ln_kernel_packed, feat=feat, eps=eps)
        in_specs = common_specs + [pl.BlockSpec((w, w), lambda i: (0, 0))]
        operands = (xp, gamma, beta, blockdiag)
    else:
        kernel = functools.partial(_ln_kernel_unpacked, feat=feat, eps=eps)
        in_specs = common_specs
        operands = (xp, gamma, beta)

    out = pl.pallas_call(
        kernel,
        out_shape=jax.ShapeDtypeStruct((packed_rows, w), dtype),
        grid_spec=pltpu.PrefetchScalarGridSpec(
            num_scalar_prefetch=0,
            grid=(grid_rows,),
            in_specs=in_specs,
            out_specs=pl.BlockSpec((rows_per_tile, w), lambda i: (i, 0)),
        ),
        compiler_params=pltpu.CompilerParams(
            # Row blocks are independent -> shardable across v7x's 2 TCs.
            dimension_semantics=("parallel",),
            # 32 MiB scoped limit is valid on every generation (v7x physical
            # VMEM is 64 MiB); the ~20 MiB workset budget leaves headroom.
            vmem_limit_bytes=32 * 1024 * 1024,
        ),
    )(*operands)

    return out.reshape(orig_shape)


def _reference(x, a_2, b_2, eps=1e-6):
    feat = x.shape[-1]
    x32 = x.astype(jnp.float32)
    mean = jnp.mean(x32, axis=-1, keepdims=True)
    std = jnp.sqrt(jnp.sum((x32 - mean) ** 2, axis=-1, keepdims=True) / (feat - 1))
    return (a_2 * (x32 - mean) / (std + eps) + b_2).astype(x.dtype)


if __name__ == "__main__":
    key = jax.random.PRNGKey(0)
    k1, k2, k3, k4, k5 = jax.random.split(key, 5)

    # Case 1: module-style (batch, seq_len, features) with F < 128
    # -> lane-dense packed path (g = 4, W = 128, block-diagonal MXU reduction).
    B, S, F = 2, 8, 32
    x = jax.random.normal(k1, (B, S, F), dtype=jnp.float32)
    a_2 = 1.0 + 0.1 * jax.random.normal(k2, (F,), dtype=jnp.float32)
    b_2 = 0.1 * jax.random.normal(k3, (F,), dtype=jnp.float32)
    out = jax.block_until_ready(layer_norm(x, a_2, b_2))
    ref = _reference(x, a_2, b_2)
    assert out.shape == x.shape
    assert jnp.allclose(out, ref, atol=1e-4, rtol=1e-4), float(jnp.max(jnp.abs(out - ref)))

    # Case 2: F = 128 -> unpacked path, single full-array block, no padding.
    B2, S2, F2 = 2, 5, 128
    x2 = jax.random.normal(k4, (B2, S2, F2), dtype=jnp.float32)
    a2 = 1.0 + 0.1 * jax.random.normal(k5, (F2,), dtype=jnp.float32)
    b2 = jnp.ones((F2,), dtype=jnp.float32)
    out2 = jax.block_until_ready(layer_norm(x2, a2, b2))
    ref2 = _reference(x2, a2, b2)
    assert out2.shape == x2.shape
    assert jnp.allclose(out2, ref2, atol=1e-4, rtol=1e-4), float(jnp.max(jnp.abs(out2 - ref2)))

    # Case 3: F = 32 but rows % g != 0 -> clean fallback to the unpacked path
    # (no padding copy; masked-lane stores only on this rare path).
    B3, S3, F3 = 2, 7, 32
    x3 = jax.random.normal(jax.random.PRNGKey(7), (B3, S3, F3), dtype=jnp.float32)
    out3 = jax.block_until_ready(layer_norm(x3, a_2, b_2))
    ref3 = _reference(x3, a_2, b_2)
    assert out3.shape == x3.shape
    assert jnp.allclose(out3, ref3, atol=1e-4, rtol=1e-4), float(jnp.max(jnp.abs(out3 - ref3)))

    # Case 4: force a tiny tile (budget override only for testing) so the row
    # count does NOT divide the tile: exercises the Pallas-masked partial
    # trailing block on the packed path (replaces the old jnp.pad behavior).
    B4, S4, F4 = 5, 8, 32          # rows=40, g=4 -> packed_rows=10, tile=8 -> grid=2
    x4 = jax.random.normal(jax.random.PRNGKey(11), (B4, S4, F4), dtype=jnp.float32)
    out4 = jax.block_until_ready(
        layer_norm(x4, a_2, b_2, vmem_workset_budget=35840))
    ref4 = _reference(x4, a_2, b_2)
    assert out4.shape == x4.shape
    assert jnp.allclose(out4, ref4, atol=1e-4, rtol=1e-4), float(jnp.max(jnp.abs(out4 - ref4)))

    print("KERNEL_OK")
</pallas_src>

<mosaic_0001>
module attributes {stable_mosaic.version = 11 : i64} {
  func.func @_ln_kernel_packed(%arg0: i32, %arg1: memref<4x128xf32, #tpu.memory_space<vmem>>, %arg2: memref<1x128xf32, #tpu.memory_space<vmem>>, %arg3: memref<1x128xf32, #tpu.memory_space<vmem>>, %arg4: memref<128x128xf32, #tpu.memory_space<vmem>>, %arg5: memref<4x128xf32, #tpu.memory_space<vmem>>) attributes {dimension_semantics = [#tpu.dimension_semantics<parallel>], iteration_bounds = array<i64: 1>, scalar_prefetch = 0 : i64, scratch_operands = 0 : i64, tpu.core_type = #tpu.core_type<tc>, window_params = [{transform_indices = @transform_0, window_bounds = array<i64: 4, 128>}, {pipeline_mode = #tpu.pipeline_mode<synchronous>, transform_indices = @transform_1, window_bounds = array<i64: 1, 128>}, {pipeline_mode = #tpu.pipeline_mode<synchronous>, transform_indices = @transform_2, window_bounds = array<i64: 1, 128>}, {pipeline_mode = #tpu.pipeline_mode<synchronous>, transform_indices = @transform_3, window_bounds = array<i64: 128, 128>}, {transform_indices = @transform_4, window_bounds = array<i64: 4, 128>}]} {
    %c0 = arith.constant 0 : index
    %c0_0 = arith.constant 0 : index
    %0 = vector.load %arg1[%c0, %c0_0] : memref<4x128xf32, #tpu.memory_space<vmem>>, vector<4x128xf32>
    %c0_1 = arith.constant 0 : index
    %c0_2 = arith.constant 0 : index
    %1 = vector.load %arg2[%c0_1, %c0_2] : memref<1x128xf32, #tpu.memory_space<vmem>>, vector<1x128xf32>
    %c0_3 = arith.constant 0 : index
    %c0_4 = arith.constant 0 : index
    %2 = vector.load %arg3[%c0_3, %c0_4] : memref<1x128xf32, #tpu.memory_space<vmem>>, vector<1x128xf32>
    %c0_5 = arith.constant 0 : index
    %c0_6 = arith.constant 0 : index
    %3 = vector.load %arg4[%c0_5, %c0_6] : memref<128x128xf32, #tpu.memory_space<vmem>>, vector<128x128xf32>
    %cst = arith.constant dense<0.000000e+00> : vector<4x128xf32>
    %4 = tpu.matmul %0, %3, %cst {dimension_numbers = #tpu.dot_dimension_numbers<[1], [0], [0], [1], [0, 0, 1, 1], [], []>} : vector<4x128xf32>, vector<128x128xf32>, vector<4x128xf32> -> vector<4x128xf32>
    %5 = arith.mulf %0, %0 : vector<4x128xf32>
    %cst_7 = arith.constant dense<0.000000e+00> : vector<4x128xf32>
    %6 = tpu.matmul %5, %3, %cst_7 {dimension_numbers = #tpu.dot_dimension_numbers<[1], [0], [0], [1], [0, 0, 1, 1], [], []>} : vector<4x128xf32>, vector<128x128xf32>, vector<4x128xf32> -> vector<4x128xf32>
    %cst_8 = arith.constant 3.125000e-02 : f32
    %7 = vector.broadcast %cst_8 : f32 to vector<4x128xf32>
    %8 = arith.mulf %4, %7 : vector<4x128xf32>
    %9 = arith.mulf %4, %8 : vector<4x128xf32>
    %10 = arith.subf %6, %9 : vector<4x128xf32>
    %cst_9 = arith.constant 0.0322580636 : f32
    %11 = vector.broadcast %cst_9 : f32 to vector<4x128xf32>
    %12 = arith.mulf %10, %11 : vector<4x128xf32>
    %cst_10 = arith.constant 0.000000e+00 : f32
    %13 = vector.broadcast %cst_10 : f32 to vector<4x128xf32>
    %14 = arith.maximumf %12, %13 : vector<4x128xf32>
    %15 = math.sqrt %14 : vector<4x128xf32>
    %cst_11 = arith.constant 9.99999997E-7 : f32
    %16 = vector.broadcast %cst_11 : f32 to vector<4x128xf32>
    %17 = arith.addf %15, %16 : vector<4x128xf32>
    %18 = tpu.reciprocal %17 {approx = true} : vector<4x128xf32> -> vector<4x128xf32>
    %19 = arith.mulf %17, %18 : vector<4x128xf32>
    %cst_12 = arith.constant 2.000000e+00 : f32
    %20 = vector.broadcast %cst_12 : f32 to vector<4x128xf32>
    %21 = arith.subf %20, %19 : vector<4x128xf32>
    %22 = arith.mulf %18, %21 : vector<4x128xf32>
    %23 = arith.subf %0, %8 : vector<4x128xf32>
    %24 = arith.mulf %23, %22 : vector<4x128xf32>
    %25 = vector.broadcast %1 : vector<1x128xf32> to vector<4x128xf32>
    %26 = arith.mulf %24, %25 : vector<4x128xf32>
    %27 = vector.broadcast %2 : vector<1x128xf32> to vector<4x128xf32>
    %28 = arith.addf %26, %27 : vector<4x128xf32>
    %c0_13 = arith.constant 0 : index
    %c0_14 = arith.constant 0 : index
    %29 = vector.load %arg5[%c0_13, %c0_14] : memref<4x128xf32, #tpu.memory_space<vmem>>, vector<4x128xf32>
    tpu.vector_store %arg5[%c0_13, %c0_14], %28 {strides = array<i32>} : memref<4x128xf32, #tpu.memory_space<vmem>>, vector<4x128xf32>,
    return
  }
  func.func @transform_0(%arg0: i32) -> (i32, i32) {
    %c0_i32 = arith.constant 0 : i32
    %c0_i32_0 = arith.constant 0 : i32
    return %arg0, %c0_i32 : i32, i32
  }
  func.func @transform_1(%arg0: i32) -> (i32, i32) {
    %c0_i32 = arith.constant 0 : i32
    %c0_i32_0 = arith.constant 0 : i32
    %c0_i32_1 = arith.constant 0 : i32
    return %c0_i32, %c0_i32_0 : i32, i32
  }
  func.func @transform_2(%arg0: i32) -> (i32, i32) {
    %c0_i32 = arith.constant 0 : i32
    %c0_i32_0 = arith.constant 0 : i32
    %c0_i32_1 = arith.constant 0 : i32
    return %c0_i32, %c0_i32_0 : i32, i32
  }
  func.func @transform_3(%arg0: i32) -> (i32, i32) {
    %c0_i32 = arith.constant 0 : i32
    %c0_i32_0 = arith.constant 0 : i32
    %c0_i32_1 = arith.constant 0 : i32
    return %c0_i32, %c0_i32_0 : i32, i32
  }
  func.func @transform_4(%arg0: i32) -> (i32, i32) {
    %c0_i32 = arith.constant 0 : i32
    %c0_i32_0 = arith.constant 0 : i32
    return %arg0, %c0_i32 : i32, i32
  }
}

</mosaic_0001>

<bundles_post_ra>
// kernel: tpu_custom_call.1
= control target key start
LH: loop header
LB: loop body
LE: loop exit
PB: predicated region body
PF: predicated region fallthrough
CT: control target
= control target key end

     0   :  { %9 = vsyncpa [#allocation3], 0  ;;  %s332_s0 = inlined_call_operand.hbm [shape: f32[4,128], index: 0, kind: input, shape index: {}]   ;;  %s333_s1 = inlined_call_operand.hbm [shape: f32[1,128], index: 1, kind: input, shape index: {}]   ;;  %s334_s2 = inlined_call_operand.vmem [shape: f32[1,128], index: 2, kind: input, shape index: {}]   ;;  %s335_s3 = inlined_call_operand.hbm [shape: f32[128,128], index: 3, kind: input, shape index: {}]   ;;  %s336_s4 = inlined_call_operand.hbm [shape: f32[4,128], index: 4, kind: output, shape index: {}]  }
   0x1   :  { %10 = vsyncpa [#allocation6], 0  ;;  %s28_s17 = sshll.u32 %s333_s1, 4  ;;  %s29_s17 = int_to_ptr.hbm [resolvable:$true] %s28_s17 }
   0x2   :  { %11 = vsyncpa [#allocation4], 0  ;;  %s286_s18 = smov [#allocation5]   ;;  %s17_s22 = sshll.u32 %s332_s0, 4  ;;  %s18_s22 = int_to_ptr.hbm [resolvable:$true] %s17_s22 }
   0x3   :  { %s30_s19 = sshll.u32 %s286_s18, 4  ;;  %s287_s23 = smov [#allocation2]   ;;  %s31_s19 = int_to_ptr.vmem [resolvable:$true] %s30_s19 }
   0x4   :  { %33 = dma.hbm_to_vmem [thread:$0]  %s29_s17, 16, %s31_s19, [#allocation6]  }
   0x5   :  { %s19_s24 = sshll.u32 %s287_s23, 4  ;;  %s40_s27 = sshll.u32 %s335_s3, 4  ;;  %s20_s24 = int_to_ptr.vmem [resolvable:$true] %s19_s24  ;;  %s41_s27 = int_to_ptr.hbm [resolvable:$true] %s40_s27 }
   0x6   :  { %22 = dma.hbm_to_vmem [thread:$0]  %s18_s22, 64, %s20_s24, [#allocation3]  }
   0x7   :  { %s288_s1 = smov [#allocation7]   ;;  %s289_s29 = smov 128  }
   0x8   :  { %s42_s28 = sshll.u32 %s288_s1, 4  ;;  %s290_s30 = smov 8   ;;  %s43_s28 = int_to_ptr.vmem [resolvable:$true] %s42_s28 }
   0x9   :  { %48 = dma.hbm_to_vmem [thread:$0]  %s41_s27, 2048, %s43_s28, [#allocation6], %s289_s29, %s289_s29, %s290_s30  }
   0xa   :  { %280 = dma.done.wait [#allocation3], 64  }
   0xb   :  { %281 = vsyncadd [#allocation3], 4294967232 }
   0xc   :  { %282 = dma.done.wait [#allocation6], 2064  }
   0xd   :  { %283 = vsyncadd [#allocation6], 4294965232  ;;  %v79_v0 = vld [vmem:[#allocation7 + $0x78] sm:$0xff]  ;;  %v78_v1 = vld [vmem:[#allocation7 + $0x70] sm:$0xff]  ;;  %s291_s5 = smov [#allocation8]   ;;  %s161_s9 = sshll.u32 %s336_s4, 4  ;;  %s162_s9 = int_to_ptr.hbm [resolvable:$true] %s161_s9 }
   0xe   :  { %80 = vmatpush.msra.mxu0 %v79_v0  ;;  %101 = vmatpush.msra.mxu1 %v79_v0  ;;  %v77_v2 = vld [vmem:[#allocation7 + $0x68] sm:$0xff]  ;;  %v76_v3 = vld [vmem:[#allocation7 + $0x60] sm:$0xff]  ;;  %v75_v4 = vld [vmem:[#allocation7 + $0x58] sm:$0xff]  ;;  %s159_s6 = sshll.u32 %s291_s5, 4  ;;  %s160_s6 = int_to_ptr.vmem [resolvable:$true] %s159_s6 }
   0xf   :  { %v74_v5 = vld [vmem:[#allocation7 + $0x50] sm:$0xff]  ;;  %v73_v6 = vld [vmem:[#allocation7 + $0x48] sm:$0xff]  ;;  %v72_v7 = vld [vmem:[#allocation7 + $0x40] sm:$0xff] }
  0x10   :  { %81 = vmatpush.msra.mxu0 %v78_v1  ;;  %102 = vmatpush.msra.mxu1 %v78_v1  ;;  %v71_v8 = vld [vmem:[#allocation7 + $0x38] sm:$0xff]  ;;  %v70_v9 = vld [vmem:[#allocation7 + $0x30] sm:$0xff]  ;;  %v69_v10 = vld [vmem:[#allocation7 + $0x28] sm:$0xff] }
  0x11   :  { %v68_v11 = vld [vmem:[#allocation7 + $0x20] sm:$0xff]  ;;  %v67_v12 = vld [vmem:[#allocation7 + $0x18] sm:$0xff]  ;;  %v66_v13 = vld [vmem:[#allocation7 + $0x10] sm:$0xff] }
  0x12   :  { %82 = vmatpush.msra.mxu0 %v77_v2  ;;  %103 = vmatpush.msra.mxu1 %v77_v2  ;;  %v65_v14 = vld [vmem:[#allocation7 + $0x8] sm:$0xff]  ;;  %v61_v15 = vld [vmem:[#allocation2] sm:$0xf]  ;;  %v64_v16 = vld [vmem:[#allocation7] sm:$0xff] }
  0x13   :  { %v100_v17 = vmul.f32 %v61_v15, %v61_v15  ;;  %v178_v41 = vld [vmem:[#allocation5] ss:$0 sm:$0xff]  ;;  %v179_v43 = vld [vmem:[%s334_s2] ss:$0 sm:$0xff] }
  0x14   :  { %83 = vmatpush.msra.mxu0 %v76_v3  ;;  %104 = vmatpush.msra.mxu1 %v76_v3 }
  0x16   :  { %84 = vmatpush.msra.mxu0 %v75_v4  ;;  %105 = vmatpush.msra.mxu1 %v75_v4 }
  0x18   :  { %85 = vmatpush.msra.mxu0 %v74_v5  ;;  %106 = vmatpush.msra.mxu1 %v74_v5 }
  0x1a   :  { %86 = vmatpush.msra.mxu0 %v73_v6  ;;  %107 = vmatpush.msra.mxu1 %v73_v6 }
  0x1c   :  { %87 = vmatpush.msra.mxu0 %v72_v7  ;;  %108 = vmatpush.msra.mxu1 %v72_v7 }
  0x1e   :  { %88 = vmatpush.msra.mxu0 %v71_v8  ;;  %109 = vmatpush.msra.mxu1 %v71_v8 }
  0x20   :  { %89 = vmatpush.msra.mxu0 %v70_v9  ;;  %110 = vmatpush.msra.mxu1 %v70_v9 }
  0x22   :  { %90 = vmatpush.msra.mxu0 %v69_v10  ;;  %111 = vmatpush.msra.mxu1 %v69_v10 }
  0x24   :  { %91 = vmatpush.msra.mxu0 %v68_v11  ;;  %112 = vmatpush.msra.mxu1 %v68_v11 }
  0x26   :  { %92 = vmatpush.msra.mxu0 %v67_v12  ;;  %113 = vmatpush.msra.mxu1 %v67_v12 }
  0x28   :  { %93 = vmatpush.msra.mxu0 %v66_v13  ;;  %114 = vmatpush.msra.mxu1 %v66_v13 }
  0x2a   :  { %94 = vmatpush.msra.mxu0 %v65_v14  ;;  %115 = vmatpush.msra.mxu1 %v65_v14 }
  0x2c   :  { %95 = vmatpush.msra.mxu0 %v64_v16  ;;  %116 = vmatpush.msra.mxu1 %v64_v16 }
  0x2d   :  { %96 = vmatmul.f32.vlgmr.msra.gmra.mxu0 %v61_v15  ;;  %117 = vmatmul.f32.vlgmr.msra.gmra.mxu1 %v100_v17 }
  0xaa   :  { %v97_v18 = vpop.f32.mrf.mxu0  ;;  %v118_v20 = vpop.f32.mrf.mxu1 }
  0xab   :  { %v121_v19 = vmul.f32 0.03125, %v97_v18 }
  0xad   :  { %v122_v21 = vmul.f32 %v121_v19, %v97_v18  ;;  %v143_v39 = vsub.f32 %v61_v15, %v121_v19 }
  0xaf   :  { %v123_v22 = vsub.f32 %v118_v20, %v122_v21 }
  0xb1   :  { %v124_v23 = vmul.f32 0.032258064, %v123_v22 }
  0xb3   :  { %v125_v24 = vmax.f32 %v124_v23, 0.0 }
  0xb5   :  { %180 = vrsqrt.f32 %v125_v24  ;;  %vm133_vm0 = vcmp.eq.f32.partialorder %v125_v24, inf  ;;  %v136_v32 = vand.u32 2147483648, %v125_v24  ;;  %vm135_vm1 = vcmp.eq.f32.partialorder %v125_v24, 0.0 }
  0xbb   :  { %v181_v25 = vpop.eup %180 }
  0xbc   :  { %v127_v26 = vmul.f32 %v181_v25, %v125_v24 }
  0xbe   :  { %v128_v27 = vmul.f32 %v181_v25, %v127_v26 }
  0xc0   :  { %v129_v28 = vmul.f32 0.5, %v128_v27 }
  0xc2   :  { %v130_v29 = vsub.f32 1.5, %v129_v28 }
  0xc4   :  { %v131_v30 = vmul.f32 %v181_v25, %v130_v29 }
  0xc6   :  { %v132_v31 = vmul.f32 %v131_v30, %v125_v24 }
  0xc8   :  { %v134_v33 = vsel %vm133_vm0, %v125_v24, %v132_v31 }
  0xc9   :  { %v137_v34 = vsel %vm135_vm1, %v136_v32, %v134_v33 }
  0xca   :  { %v138_v35 = vadd.f32 1e-06, %v137_v34 }
  0xcc   :  { %182 = vrcp.f32 %v138_v35 }
  0xd2   :  { %v183_v36 = vpop.eup %182 }
  0xd3   :  { %v140_v37 = vmul.f32 %v183_v36, %v138_v35 }
  0xd5   :  { %v141_v38 = vsub.f32 2.0, %v140_v37 }
  0xd7   :  { %v142_v40 = vmul.f32 %v183_v36, %v141_v38 }
  0xd9   :  { %v144_v42 = vmul.f32 %v143_v39, %v142_v40 }
  0xdb   :  { %v148_v44 = vmul.f32 %v178_v41, %v144_v42 }
  0xdd   :  { %v152_v45 = vadd.f32 %v179_v43, %v148_v44 }
  0xdf   :  { %153 = vst [vmem:[#allocation8] sm:$0xf] %v152_v45 }
  0xe0   :  { %164 = dma.vmem_to_hbm [thread:$0]  %s160_s6, 64, %s162_s9, [#allocation4]  }
  0xe1   :  { %284 = dma.done.wait [#allocation4], 64  }
  0xe2   :  { %285 = vsyncadd [#allocation4], 4294967232 }
  0xe3   :  { %169 = vsyncpa [#allocation3], 1 }
  0xe4   :  { %170 = vsyncpa [#allocation6], 1 }
  0xe5   :  { %171 = vsyncpa [#allocation4], 1 }

</bundles_post_ra>
